<compile_context>
chip_gen: v6e
topology: v6e:2x2x1
jax: 0.10.0
libtpu: 0.0.40
codegen_flags: <defaults>
</compile_context>

<pallas_src>
import functools

import numpy as np

import jax
import jax.numpy as jnp
from jax.experimental import pallas as pl
from jax.experimental.pallas import tpu as pltpu

_LN_EPS = 1e-5   # PyTorch nn.LayerNorm default
_LANE = 128      # TPU lane width (last dim)
_SUBLANE = 8     # TPU sublane width (second-to-last dim)


def _round_up(x, m):
    return (x + m - 1) // m * m


def _masked_layernorm(h, gamma, beta, valid_dim):
    """LayerNorm over the last axis, ignoring zero-padded lanes >= valid_dim.

    Invariants relied upon (guaranteed by prepare_params):
      * padded lanes of `h` are exactly zero (zero-padded weight cols / biases),
        so the plain sum for the mean already equals the sum over valid lanes;
      * gamma/beta are zero on padded lanes, so padded output lanes stay zero.
    Only the variance sum needs an explicit lane mask (centered values are -mu
    on padded lanes).  Biased variance, eps inside rsqrt -> matches PyTorch.
    """
    padded_dim = h.shape[-1]
    inv_d = 1.0 / float(valid_dim)
    mu = jnp.sum(h, axis=-1, keepdims=True) * inv_d
    c = h - mu
    if valid_dim == padded_dim:
        cm = c
    else:
        lane = jax.lax.broadcasted_iota(jnp.int32, h.shape, h.ndim - 1)
        cm = jnp.where(lane < valid_dim, c, 0.0)
    var = jnp.sum(cm * cm, axis=-1, keepdims=True) * inv_d
    return c * jax.lax.rsqrt(var + _LN_EPS) * gamma + beta


def _mlp_kernel(x_ref,
                w1_ref, p1_ref,
                w2_ref, p2_ref,
                w3_ref, b3_ref,
                o_ref,
                *, output_tanh: bool, d1: int, d2: int):
    x = x_ref[...]

    def dot(a, w_ref):
        w = w_ref[...]
        # If weights are stored bf16, cast the activation to match (MXU-native
        # path); accumulate in f32 either way.
        return jnp.dot(a.astype(w.dtype), w, preferred_element_type=jnp.float32)

    # Layer 1: Linear -> ReLU -> LayerNorm (over true d1 lanes)
    h = dot(x, w1_ref) + p1_ref[0:1, :]
    h = jnp.maximum(h, 0.0)
    h = _masked_layernorm(h, p1_ref[1:2, :], p1_ref[2:3, :], d1)

    # Layer 2: Linear -> ReLU -> LayerNorm (over true d2 lanes)
    h = dot(h, w2_ref) + p2_ref[0:1, :]
    h = jnp.maximum(h, 0.0)
    h = _masked_layernorm(h, p2_ref[1:2, :], p2_ref[2:3, :], d2)

    # Layer 3: Linear -> ReLU (-> tanh)
    h = dot(h, w3_ref) + b3_ref[...]
    h = jnp.maximum(h, 0.0)
    if output_tanh:
        h = jnp.tanh(h)

    o_ref[...] = h.astype(o_ref.dtype)


def prepare_params(params, *, matmul_dtype=jnp.float32):
    """One-time padding/packing of the module parameters (hoisted out of the
    per-call forward so no weight is re-padded on every step).

    Weights -> (in_p, out_p) in `matmul_dtype` (f32 default, bf16 optional).
    (bias, gamma, beta) per LN layer -> packed into one (3, d_p) f32 array.
    """
    d_in, d1 = params["w1"].shape
    _, d2 = params["w2"].shape
    _, d_out = params["w3"].shape
    d_in_p = _round_up(d_in, _LANE)
    d1_p = _round_up(d1, _LANE)
    d2_p = _round_up(d2, _LANE)
    d_out_p = _round_up(d_out, _LANE)

    def pad2(a, rows, cols, dtype=jnp.float32):
        return jnp.pad(a, ((0, rows - a.shape[0]), (0, cols - a.shape[1]))).astype(dtype)

    def pack3(b, g, be, cols):
        v = jnp.concatenate([b, g, be], axis=0)             # (3, d)
        return jnp.pad(v, ((0, 0), (0, cols - v.shape[1]))).astype(jnp.float32)

    return {
        "w1": pad2(params["w1"], d_in_p, d1_p, matmul_dtype),
        "p1": pack3(params["b1"], params["g1"], params["be1"], d1_p),
        "w2": pad2(params["w2"], d1_p, d2_p, matmul_dtype),
        "p2": pack3(params["b2"], params["g2"], params["be2"], d2_p),
        "w3": pad2(params["w3"], d2_p, d_out_p, matmul_dtype),
        "b3": pad2(params["b3"], 1, d_out_p),
        "dims": (d_in, d1, d2, d_out),
        "padded_dims": (d_in_p, d1_p, d2_p, d_out_p),
        "wbytes": int(np.dtype(matmul_dtype).itemsize),
    }


def three_layer_forward(x, prepared, *, output_tanh: bool, batch_tile: int = 1024):
    """x: (B, input_dim) float32. prepared: output of prepare_params()."""
    B, d_in = x.shape
    d_in0, d1, d2, d_out = prepared["dims"]
    assert d_in == d_in0, "input_dim mismatch with prepared params"
    d_in_p, d1_p, d2_p, d_out_p = prepared["padded_dims"]
    wbytes = prepared["wbytes"]

    # Batch tile: cap so the grid has >= 2 steps when B is large enough
    # (lets "parallel" shard across v7x's 2 TensorCores), round to sublanes.
    tb = min(batch_tile, _round_up(pl.cdiv(max(B, 1), 2), _SUBLANE))
    tb = max(tb, _SUBLANE)
    b_p = _round_up(B, tb)
    grid = (b_p // tb,)

    xp = jnp.pad(x.astype(jnp.float32),
                 ((0, b_p - B), (0, d_in_p - d_in)))

    # Resident operands: constant block index, DMA'd once, single-buffered.
    def resident(shape):
        return pl.BlockSpec(shape, lambda i: (0, 0), pipeline_mode=pl.Buffered(1))

    in_specs = [
        pl.BlockSpec((tb, d_in_p), lambda i: (i, 0)),   # x tile (double-buffered)
        resident((d_in_p, d1_p)), resident((3, d1_p)),  # w1, [b1;g1;be1]
        resident((d1_p, d2_p)), resident((3, d2_p)),    # w2, [b2;g2;be2]
        resident((d2_p, d_out_p)), resident((1, d_out_p)),  # w3, b3
    ]
    out_specs = pl.BlockSpec((tb, d_out_p), lambda i: (i, 0))  # lane-dense store

    # Explicit VMEM budget: double-buffered activation tiles + single-buffered
    # weights/params + headroom for in-kernel intermediates & compiler scratch.
    weight_bytes = (d_in_p * d1_p + d1_p * d2_p + d2_p * d_out_p) * wbytes
    param_bytes = (8 * d1_p + 8 * d2_p + 8 * d_out_p) * 4      # sublane-padded
    act_bytes = 2 * tb * (d_in_p + d_out_p) * 4                # x/out, 2 buffers
    scratch_bytes = 2 * tb * max(d1_p, d2_p) * 4               # intermediates
    vmem_limit = weight_bytes + param_bytes + act_bytes + scratch_bytes + (4 << 20)
    vmem_limit = int(min(max(vmem_limit, 16 << 20), 60 << 20))  # stay under v7x VMEM

    flops = 2 * b_p * (d_in_p * d1_p + d1_p * d2_p + d2_p * d_out_p)
    bytes_accessed = (
        4 * (b_p * d_in_p + b_p * d_out_p)                      # activations in/out
        + weight_bytes
        + 4 * (3 * d1_p + 3 * d2_p + d_out_p)                   # bias/gamma/beta
    )
    transcendentals = b_p * (2 + (d_out_p if output_tanh else 0))

    kernel = functools.partial(_mlp_kernel, output_tanh=output_tanh, d1=d1, d2=d2)
    out_p = pl.pallas_call(
        kernel,
        grid=grid,
        out_shape=jax.ShapeDtypeStruct((b_p, d_out_p), jnp.float32),
        in_specs=in_specs,
        out_specs=out_specs,
        compiler_params=pltpu.CompilerParams(
            dimension_semantics=("parallel",),   # shard batch tiles across TCs
            vmem_limit_bytes=vmem_limit,
        ),
        cost_estimate=pl.CostEstimate(
            flops=flops,
            transcendentals=transcendentals,
            bytes_accessed=bytes_accessed,
        ),
    )(xp, prepared["w1"], prepared["p1"], prepared["w2"], prepared["p2"],
      prepared["w3"], prepared["b3"])

    # Strip padding (pure XLA slice outside the kernel).
    return out_p[:B, :d_out]


def init_params(key, input_dim, layer1_dim, layer2_dim, output_dim):
    """Deterministic init mimicking PyTorch defaults.

    Linear: weight/bias ~ U(-1/sqrt(fan_in), 1/sqrt(fan_in)); stored as (in, out)
    so the kernel computes x @ W + b (== PyTorch's x @ weight.T + bias).
    LayerNorm: gamma = ones, beta = zeros.
    """
    def linear(k, fan_in, fan_out):
        kw, kb = jax.random.split(k)
        bound = 1.0 / jnp.sqrt(jnp.float32(fan_in))
        w = jax.random.uniform(kw, (fan_in, fan_out), jnp.float32, -bound, bound)
        b = jax.random.uniform(kb, (1, fan_out), jnp.float32, -bound, bound)
        return w, b

    k1, k2, k3 = jax.random.split(key, 3)
    w1, b1 = linear(k1, input_dim, layer1_dim)
    w2, b2 = linear(k2, layer1_dim, layer2_dim)
    w3, b3 = linear(k3, layer2_dim, output_dim)
    return {
        "w1": w1, "b1": b1,
        "g1": jnp.ones((1, layer1_dim), jnp.float32),
        "be1": jnp.zeros((1, layer1_dim), jnp.float32),
        "w2": w2, "b2": b2,
        "g2": jnp.ones((1, layer2_dim), jnp.float32),
        "be2": jnp.zeros((1, layer2_dim), jnp.float32),
        "w3": w3, "b3": b3,
    }


def _reference_forward(x, p, *, output_tanh):
    h = x @ p["w1"] + p["b1"]
    h = jnp.maximum(h, 0.0)
    mu = jnp.mean(h, -1, keepdims=True)
    var = jnp.mean((h - mu) ** 2, -1, keepdims=True)
    h = (h - mu) / jnp.sqrt(var + _LN_EPS) * p["g1"] + p["be1"]
    h = h @ p["w2"] + p["b2"]
    h = jnp.maximum(h, 0.0)
    mu = jnp.mean(h, -1, keepdims=True)
    var = jnp.mean((h - mu) ** 2, -1, keepdims=True)
    h = (h - mu) / jnp.sqrt(var + _LN_EPS) * p["g2"] + p["be2"]
    h = h @ p["w3"] + p["b3"]
    h = jnp.maximum(h, 0.0)
    return jnp.tanh(h) if output_tanh else h


# TODO(synk): checkpoint save/load and the Adam optimizer from the PyTorch
# module are host-side state management, not forward compute; not translated.

if __name__ == "__main__":
    # Small shapes consistent with the module's forward: (batch, input_dim)
    B, input_dim, layer1_dim, layer2_dim, output_dim = 2, 16, 32, 32, 8

    key = jax.random.PRNGKey(0)
    kx, kp = jax.random.split(key)
    x = jax.random.normal(kx, (B, input_dim), jnp.float32)
    params = init_params(kp, input_dim, layer1_dim, layer2_dim, output_dim)

    # One-time param padding/packing (hoisted out of the hot path).
    prepared = prepare_params(params)   # f32 matmul path (keeps 1e-5 tolerance)

    out = three_layer_forward(x, prepared, output_tanh=True)
    out = jax.block_until_ready(out)
    ref = _reference_forward(x, params, output_tanh=True)
    assert out.shape == (B, output_dim)
    assert jnp.allclose(out, ref, atol=1e-5, rtol=1e-5), "mismatch vs JAX reference"

    # output_tanh=False path.
    out_nt = jax.block_until_ready(three_layer_forward(x, prepared, output_tanh=False))
    ref_nt = _reference_forward(x, params, output_tanh=False)
    assert jnp.allclose(out_nt, ref_nt, atol=1e-5, rtol=1e-5), "mismatch (no tanh)"

    # Larger, multi-tile batch (exercises the batch grid + grid>=2 cap).
    B2 = 1024
    x2 = jax.random.normal(jax.random.PRNGKey(1), (B2, input_dim), jnp.float32)
    out2 = jax.block_until_ready(three_layer_forward(x2, prepared, output_tanh=True))
    ref2 = _reference_forward(x2, params, output_tanh=True)
    assert out2.shape == (B2, output_dim)
    assert jnp.allclose(out2, ref2, atol=1e-5, rtol=1e-5), "mismatch (batched)"

    # Optional bf16-MXU path (looser tolerance; biggest raw-throughput lever).
    prepared_bf16 = prepare_params(params, matmul_dtype=jnp.bfloat16)
    out_bf = jax.block_until_ready(three_layer_forward(x2, prepared_bf16, output_tanh=True))
    assert jnp.allclose(out_bf, ref2, atol=3e-2, rtol=3e-2), "mismatch (bf16 path)"

    print("KERNEL_OK")
</pallas_src>

<mosaic_0001>
module attributes {stable_mosaic.version = 11 : i64} {
  func.func @_mlp_kernel(%arg0: i32, %arg1: memref<8x128xf32, #tpu.memory_space<vmem>>, %arg2: memref<128x128xf32, #tpu.memory_space<vmem>>, %arg3: memref<3x128xf32, #tpu.memory_space<vmem>>, %arg4: memref<128x128xf32, #tpu.memory_space<vmem>>, %arg5: memref<3x128xf32, #tpu.memory_space<vmem>>, %arg6: memref<128x128xf32, #tpu.memory_space<vmem>>, %arg7: memref<1x128xf32, #tpu.memory_space<vmem>>, %arg8: memref<8x128xf32, #tpu.memory_space<vmem>>) attributes {dimension_semantics = [#tpu.dimension_semantics<parallel>], iteration_bounds = array<i64: 1>, scalar_prefetch = 0 : i64, scratch_operands = 0 : i64, tpu.core_type = #tpu.core_type<tc>, window_params = [{transform_indices = @transform_0, window_bounds = array<i64: 8, 128>}, {pipeline_mode = #tpu.pipeline_mode<synchronous>, transform_indices = @transform_1, window_bounds = array<i64: 128, 128>}, {pipeline_mode = #tpu.pipeline_mode<synchronous>, transform_indices = @transform_2, window_bounds = array<i64: 3, 128>}, {pipeline_mode = #tpu.pipeline_mode<synchronous>, transform_indices = @transform_3, window_bounds = array<i64: 128, 128>}, {pipeline_mode = #tpu.pipeline_mode<synchronous>, transform_indices = @transform_4, window_bounds = array<i64: 3, 128>}, {pipeline_mode = #tpu.pipeline_mode<synchronous>, transform_indices = @transform_5, window_bounds = array<i64: 128, 128>}, {pipeline_mode = #tpu.pipeline_mode<synchronous>, transform_indices = @transform_6, window_bounds = array<i64: 1, 128>}, {transform_indices = @transform_7, window_bounds = array<i64: 8, 128>}]} {
    %c0 = arith.constant 0 : index
    %c0_0 = arith.constant 0 : index
    %0 = vector.load %arg1[%c0, %c0_0] : memref<8x128xf32, #tpu.memory_space<vmem>>, vector<8x128xf32>
    %c0_1 = arith.constant 0 : index
    %c0_2 = arith.constant 0 : index
    %1 = vector.load %arg2[%c0_1, %c0_2] : memref<128x128xf32, #tpu.memory_space<vmem>>, vector<128x128xf32>
    %cst = arith.constant dense<0.000000e+00> : vector<8x128xf32>
    %2 = tpu.matmul %0, %1, %cst {dimension_numbers = #tpu.dot_dimension_numbers<[1], [0], [0], [1], [0, 0, 1, 1], [], []>} : vector<8x128xf32>, vector<128x128xf32>, vector<8x128xf32> -> vector<8x128xf32>
    %c0_3 = arith.constant 0 : index
    %c0_4 = arith.constant 0 : index
    %3 = vector.load %arg3[%c0_3, %c0_4] : memref<3x128xf32, #tpu.memory_space<vmem>>, vector<1x128xf32>
    %4 = vector.broadcast %3 : vector<1x128xf32> to vector<8x128xf32>
    %5 = arith.addf %2, %4 : vector<8x128xf32>
    %cst_5 = arith.constant 0.000000e+00 : f32
    %6 = vector.broadcast %cst_5 : f32 to vector<8x128xf32>
    %7 = arith.maximumf %5, %6 : vector<8x128xf32>
    %c1 = arith.constant 1 : index
    %c0_6 = arith.constant 0 : index
    %8 = vector.load %arg3[%c1, %c0_6] : memref<3x128xf32, #tpu.memory_space<vmem>>, vector<1x128xf32>
    %c2 = arith.constant 2 : index
    %c0_7 = arith.constant 0 : index
    %9 = vector.load %arg3[%c2, %c0_7] : memref<3x128xf32, #tpu.memory_space<vmem>>, vector<1x128xf32>
    %cst_8 = arith.constant dense<0.000000e+00> : vector<8xf32>
    %10 = vector.multi_reduction <add>, %7, %cst_8 [1] : vector<8x128xf32> to vector<8xf32>
    %11 = vector.shape_cast %10 : vector<8xf32> to vector<8x1xf32>
    %cst_9 = arith.constant 3.125000e-02 : f32
    %12 = vector.broadcast %cst_9 : f32 to vector<8x1xf32>
    %13 = arith.mulf %11, %12 : vector<8x1xf32>
    %14 = vector.broadcast %13 : vector<8x1xf32> to vector<8x128xf32>
    %15 = arith.subf %7, %14 : vector<8x128xf32>
    %16 = tpu.iota {dimensions = array<i32: 1>} : vector<8x128xi32>
    %c32_i32 = arith.constant 32 : i32
    %17 = vector.broadcast %c32_i32 : i32 to vector<8x128xi32>
    %18 = arith.cmpi slt, %16, %17 : vector<8x128xi32>
    %cst_10 = arith.constant 0.000000e+00 : f32
    %19 = vector.broadcast %cst_10 : f32 to vector<8x128xf32>
    %20 = arith.select %18, %15, %19 : vector<8x128xi1>, vector<8x128xf32>
    %21 = arith.mulf %20, %20 : vector<8x128xf32>
    %cst_11 = arith.constant dense<0.000000e+00> : vector<8xf32>
    %22 = vector.multi_reduction <add>, %21, %cst_11 [1] : vector<8x128xf32> to vector<8xf32>
    %23 = vector.shape_cast %22 : vector<8xf32> to vector<8x1xf32>
    %cst_12 = arith.constant 3.125000e-02 : f32
    %24 = vector.broadcast %cst_12 : f32 to vector<8x1xf32>
    %25 = arith.mulf %23, %24 : vector<8x1xf32>
    %cst_13 = arith.constant 9.99999974E-6 : f32
    %26 = vector.broadcast %cst_13 : f32 to vector<8x1xf32>
    %27 = arith.addf %25, %26 : vector<8x1xf32>
    %28 = math.rsqrt %27 : vector<8x1xf32>
    %29 = vector.broadcast %28 : vector<8x1xf32> to vector<8x128xf32>
    %30 = arith.mulf %15, %29 : vector<8x128xf32>
    %31 = vector.broadcast %8 : vector<1x128xf32> to vector<8x128xf32>
    %32 = arith.mulf %30, %31 : vector<8x128xf32>
    %33 = vector.broadcast %9 : vector<1x128xf32> to vector<8x128xf32>
    %34 = arith.addf %32, %33 : vector<8x128xf32>
    %c0_14 = arith.constant 0 : index
    %c0_15 = arith.constant 0 : index
    %35 = vector.load %arg4[%c0_14, %c0_15] : memref<128x128xf32, #tpu.memory_space<vmem>>, vector<128x128xf32>
    %cst_16 = arith.constant dense<0.000000e+00> : vector<8x128xf32>
    %36 = tpu.matmul %34, %35, %cst_16 {dimension_numbers = #tpu.dot_dimension_numbers<[1], [0], [0], [1], [0, 0, 1, 1], [], []>} : vector<8x128xf32>, vector<128x128xf32>, vector<8x128xf32> -> vector<8x128xf32>
    %c0_17 = arith.constant 0 : index
    %c0_18 = arith.constant 0 : index
    %37 = vector.load %arg5[%c0_17, %c0_18] : memref<3x128xf32, #tpu.memory_space<vmem>>, vector<1x128xf32>
    %38 = vector.broadcast %37 : vector<1x128xf32> to vector<8x128xf32>
    %39 = arith.addf %36, %38 : vector<8x128xf32>
    %cst_19 = arith.constant 0.000000e+00 : f32
    %40 = vector.broadcast %cst_19 : f32 to vector<8x128xf32>
    %41 = arith.maximumf %39, %40 : vector<8x128xf32>
    %c1_20 = arith.constant 1 : index
    %c0_21 = arith.constant 0 : index
    %42 = vector.load %arg5[%c1_20, %c0_21] : memref<3x128xf32, #tpu.memory_space<vmem>>, vector<1x128xf32>
    %c2_22 = arith.constant 2 : index
    %c0_23 = arith.constant 0 : index
    %43 = vector.load %arg5[%c2_22, %c0_23] : memref<3x128xf32, #tpu.memory_space<vmem>>, vector<1x128xf32>
    %cst_24 = arith.constant dense<0.000000e+00> : vector<8xf32>
    %44 = vector.multi_reduction <add>, %41, %cst_24 [1] : vector<8x128xf32> to vector<8xf32>
    %45 = vector.shape_cast %44 : vector<8xf32> to vector<8x1xf32>
    %cst_25 = arith.constant 3.125000e-02 : f32
    %46 = vector.broadcast %cst_25 : f32 to vector<8x1xf32>
    %47 = arith.mulf %45, %46 : vector<8x1xf32>
    %48 = vector.broadcast %47 : vector<8x1xf32> to vector<8x128xf32>
    %49 = arith.subf %41, %48 : vector<8x128xf32>
    %50 = tpu.iota {dimensions = array<i32: 1>} : vector<8x128xi32>
    %c32_i32_26 = arith.constant 32 : i32
    %51 = vector.broadcast %c32_i32_26 : i32 to vector<8x128xi32>
    %52 = arith.cmpi slt, %50, %51 : vector<8x128xi32>
    %cst_27 = arith.constant 0.000000e+00 : f32
    %53 = vector.broadcast %cst_27 : f32 to vector<8x128xf32>
    %54 = arith.select %52, %49, %53 : vector<8x128xi1>, vector<8x128xf32>
    %55 = arith.mulf %54, %54 : vector<8x128xf32>
    %cst_28 = arith.constant dense<0.000000e+00> : vector<8xf32>
    %56 = vector.multi_reduction <add>, %55, %cst_28 [1] : vector<8x128xf32> to vector<8xf32>
    %57 = vector.shape_cast %56 : vector<8xf32> to vector<8x1xf32>
    %cst_29 = arith.constant 3.125000e-02 : f32
    %58 = vector.broadcast %cst_29 : f32 to vector<8x1xf32>
    %59 = arith.mulf %57, %58 : vector<8x1xf32>
    %cst_30 = arith.constant 9.99999974E-6 : f32
    %60 = vector.broadcast %cst_30 : f32 to vector<8x1xf32>
    %61 = arith.addf %59, %60 : vector<8x1xf32>
    %62 = math.rsqrt %61 : vector<8x1xf32>
    %63 = vector.broadcast %62 : vector<8x1xf32> to vector<8x128xf32>
    %64 = arith.mulf %49, %63 : vector<8x128xf32>
    %65 = vector.broadcast %42 : vector<1x128xf32> to vector<8x128xf32>
    %66 = arith.mulf %64, %65 : vector<8x128xf32>
    %67 = vector.broadcast %43 : vector<1x128xf32> to vector<8x128xf32>
    %68 = arith.addf %66, %67 : vector<8x128xf32>
    %c0_31 = arith.constant 0 : index
    %c0_32 = arith.constant 0 : index
    %69 = vector.load %arg6[%c0_31, %c0_32] : memref<128x128xf32, #tpu.memory_space<vmem>>, vector<128x128xf32>
    %cst_33 = arith.constant dense<0.000000e+00> : vector<8x128xf32>
    %70 = tpu.matmul %68, %69, %cst_33 {dimension_numbers = #tpu.dot_dimension_numbers<[1], [0], [0], [1], [0, 0, 1, 1], [], []>} : vector<8x128xf32>, vector<128x128xf32>, vector<8x128xf32> -> vector<8x128xf32>
    %c0_34 = arith.constant 0 : index
    %c0_35 = arith.constant 0 : index
    %71 = vector.load %arg7[%c0_34, %c0_35] : memref<1x128xf32, #tpu.memory_space<vmem>>, vector<1x128xf32>
    %72 = vector.broadcast %71 : vector<1x128xf32> to vector<8x128xf32>
    %73 = arith.addf %70, %72 : vector<8x128xf32>
    %cst_36 = arith.constant 0.000000e+00 : f32
    %74 = vector.broadcast %cst_36 : f32 to vector<8x128xf32>
    %75 = arith.maximumf %73, %74 : vector<8x128xf32>
    %76 = math.tanh %75 : vector<8x128xf32>
    %c0_37 = arith.constant 0 : index
    %c0_38 = arith.constant 0 : index
    %77 = vector.load %arg8[%c0_37, %c0_38] : memref<8x128xf32, #tpu.memory_space<vmem>>, vector<8x128xf32>
    tpu.vector_store %arg8[%c0_37, %c0_38], %76 {strides = array<i32>} : memref<8x128xf32, #tpu.memory_space<vmem>>, vector<8x128xf32>,
    return
  }
  func.func @transform_0(%arg0: i32) -> (i32, i32) {
    %c0_i32 = arith.constant 0 : i32
    %c0_i32_0 = arith.constant 0 : i32
    return %arg0, %c0_i32 : i32, i32
  }
  func.func @transform_1(%arg0: i32) -> (i32, i32) {
    %c0_i32 = arith.constant 0 : i32
    %c0_i32_0 = arith.constant 0 : i32
    %c0_i32_1 = arith.constant 0 : i32
    return %c0_i32, %c0_i32_0 : i32, i32
  }
  func.func @transform_2(%arg0: i32) -> (i32, i32) {
    %c0_i32 = arith.constant 0 : i32
    %c0_i32_0 = arith.constant 0 : i32
    %c0_i32_1 = arith.constant 0 : i32
    return %c0_i32, %c0_i32_0 : i32, i32
  }
  func.func @transform_3(%arg0: i32) -> (i32, i32) {
    %c0_i32 = arith.constant 0 : i32
    %c0_i32_0 = arith.constant 0 : i32
    %c0_i32_1 = arith.constant 0 : i32
    return %c0_i32, %c0_i32_0 : i32, i32
  }
  func.func @transform_4(%arg0: i32) -> (i32, i32) {
    %c0_i32 = arith.constant 0 : i32
    %c0_i32_0 = arith.constant 0 : i32
    %c0_i32_1 = arith.constant 0 : i32
    return %c0_i32, %c0_i32_0 : i32, i32
  }
  func.func @transform_5(%arg0: i32) -> (i32, i32) {
    %c0_i32 = arith.constant 0 : i32
    %c0_i32_0 = arith.constant 0 : i32
    %c0_i32_1 = arith.constant 0 : i32
    return %c0_i32, %c0_i32_0 : i32, i32
  }
  func.func @transform_6(%arg0: i32) -> (i32, i32) {
    %c0_i32 = arith.constant 0 : i32
    %c0_i32_0 = arith.constant 0 : i32
    %c0_i32_1 = arith.constant 0 : i32
    return %c0_i32, %c0_i32_0 : i32, i32
  }
  func.func @transform_7(%arg0: i32) -> (i32, i32) {
    %c0_i32 = arith.constant 0 : i32
    %c0_i32_0 = arith.constant 0 : i32
    return %arg0, %c0_i32 : i32, i32
  }
}

</mosaic_0001>

<bundles_post_ra>
// kernel: tpu_custom_call.1
= control target key start
LH: loop header
LB: loop body
LE: loop exit
PB: predicated region body
PF: predicated region fallthrough
CT: control target
= control target key end

     0   :  { %12 = vsyncpa [#allocation3], 0  ;;  %s897_s0 = inlined_call_operand.hbm [shape: f32[8,128], index: 0, kind: input, shape index: {}]   ;;  %s898_s1 = inlined_call_operand.hbm [shape: f32[128,128], index: 1, kind: input, shape index: {}]   ;;  %s899_s2 = inlined_call_operand.hbm [shape: f32[3,128], index: 2, kind: input, shape index: {}]   ;;  %s900_s3 = inlined_call_operand.hbm [shape: f32[128,128], index: 3, kind: input, shape index: {}]   ;;  %s901_s4 = inlined_call_operand.vmem [shape: f32[3,128], index: 4, kind: input, shape index: {}]   ;;  %s902_s5 = inlined_call_operand.hbm [shape: f32[128,128], index: 5, kind: input, shape index: {}]   ;;  %s903_s6 = inlined_call_operand.vmem [shape: f32[1,128], index: 6, kind: input, shape index: {}]   ;;  %s904_s7 = inlined_call_operand.hbm [shape: f32[8,128], index: 7, kind: output, shape index: {}]  }
   0x1   :  { %13 = vsyncpa [#allocation6], 0 }
   0x2   :  { %14 = vsyncpa [#allocation9], 0 }
   0x3   :  { %15 = vsyncpa [#allocation4], 0  ;;  %s747_s24 = smov [#allocation5]  }
   0x4   :  { %s31_s25 = sshll.u32 %s747_s24, 4  ;;  %s32_s25 = int_to_ptr.vmem [resolvable:$true] %s31_s25 }
   0x5   :  { %s627_s26 = scalar_lea.vmem %s32_s25, 2048  ;;  %p632_p1 = scmp.lt.s32.totalorder %s32_s25, %s32_s25 }
   0x6   :  { %p628_p0 = scmp.ne.s32.totalorder %s32_s25, %s627_s26  ;;  %p633_p2 = scmp.lt.s32.totalorder %s627_s26, %s627_s26 }
   0x8   :  { %p634_p3 = por %p633_p2, %p632_p1 }
   0xa   :  { %p635_p4 = pnand %p634_p3, %p628_p0 }
   0xc   :  { %638 = shalt.err (!%p635_p4)
}
   0xd   :  { %s748_s27 = smov 128   ;;  %s749_s28 = smov 8  }
   0xe   :  { %37 = dma.hbm_to_vmem [thread:$0]  %s898_s1, 2048, %s32_s25, [#allocation6], %s748_s27, %s748_s27, %s749_s28  }
   0xf   :  { %s750_s8 = smov [#allocation8]   ;;  %s751_s10 = smov [#allocation2]  }
  0x10   :  { %s53_s9 = sshll.u32 %s750_s8, 4  ;;  %s22_s11 = sshll.u32 %s751_s10, 4  ;;  %s54_s9 = int_to_ptr.vmem [resolvable:$true] %s53_s9  ;;  %s23_s11 = int_to_ptr.vmem [resolvable:$true] %s22_s11 }
  0x11   :  { %s647_s12 = scalar_lea.vmem %s54_s9, 2048  ;;  %p652_p6 = scmp.lt.s32.totalorder %s54_s9, %s54_s9 }
  0x12   :  { %p648_p5 = scmp.ne.s32.totalorder %s54_s9, %s647_s12  ;;  %p653_p7 = scmp.lt.s32.totalorder %s647_s12, %s647_s12 }
  0x14   :  { %p654_p8 = por %p653_p7, %p652_p6 }
  0x16   :  { %p655_p9 = pnand %p654_p8, %p648_p5 }
  0x18   :  { %658 = shalt.err (!%p655_p9)
}
  0x19   :  { %59 = dma.hbm_to_vmem [thread:$0]  %s900_s3, 2048, %s54_s9, [#allocation9], %s748_s27, %s748_s27, %s749_s28  }
  0x1a   :  { %s667_s1 = scalar_lea.vmem %s23_s11, 128  ;;  %p672_p11 = scmp.lt.s32.totalorder %s23_s11, %s23_s11 }
  0x1b   :  { %p668_p10 = scmp.ne.s32.totalorder %s23_s11, %s667_s1  ;;  %p673_p12 = scmp.lt.s32.totalorder %s667_s1, %s667_s1 }
  0x1d   :  { %p674_p13 = por %p673_p12, %p672_p11 }
  0x1f   :  { %p675_p0 = pnand %p674_p13, %p668_p10 }
  0x21   :  { %678 = shalt.err (!%p675_p0)
}
  0x22   :  { %25 = dma.hbm_to_vmem [thread:$0]  %s897_s0, 128, %s23_s11, [#allocation3]  }
  0x23   :  { %s752_s17 = smov [#allocation7]   ;;  %s753_s19 = smov [#allocation10]  }
  0x24   :  { %s44_s18 = sshll.u32 %s752_s17, 4  ;;  %s67_s20 = sshll.u32 %s753_s19, 4  ;;  %s45_s18 = int_to_ptr.vmem [resolvable:$true] %s44_s18  ;;  %s68_s20 = int_to_ptr.vmem [resolvable:$true] %s67_s20 }
  0x25   :  { %s687_s21 = scalar_lea.vmem %s45_s18, 64  ;;  %p692_p2 = scmp.lt.s32.totalorder %s45_s18, %s45_s18 }
  0x26   :  { %p688_p1 = scmp.ne.s32.totalorder %s45_s18, %s687_s21  ;;  %p693_p3 = scmp.lt.s32.totalorder %s687_s21, %s687_s21 }
  0x28   :  { %p694_p4 = por %p693_p3, %p692_p2 }
  0x2a   :  { %p695_p5 = pnand %p694_p4, %p688_p1 }
  0x2c   :  { %698 = shalt.err (!%p695_p5)
}
  0x2d   :  { %47 = dma.hbm_to_vmem [thread:$0]  %s899_s2, 64, %s45_s18, [#allocation6]  }
  0x2e   :  { %s707_s23 = scalar_lea.vmem %s68_s20, 2048  ;;  %p712_p7 = scmp.lt.s32.totalorder %s68_s20, %s68_s20 }
  0x2f   :  { %p708_p6 = scmp.ne.s32.totalorder %s68_s20, %s707_s23  ;;  %p713_p8 = scmp.lt.s32.totalorder %s707_s23, %s707_s23 }
  0x31   :  { %p714_p9 = por %p713_p8, %p712_p7 }
  0x33   :  { %p715_p10 = pnand %p714_p9, %p708_p6 }
  0x35   :  { %718 = shalt.err (!%p715_p10)
}
  0x36   :  { %73 = dma.hbm_to_vmem [thread:$0]  %s902_s5, 2048, %s68_s20, [#allocation9], %s748_s27, %s748_s27, %s749_s28  }
  0x37   :  { %739 = dma.done.wait [#allocation3], 128  }
  0x38   :  { %740 = vsyncadd [#allocation3], 4294967168 }
  0x39   :  { %741 = dma.done.wait [#allocation6], 2112  }
  0x3a   :  { %742 = vsyncadd [#allocation6], 4294965184 }
  0x3b   :  { %743 = dma.done.wait [#allocation9], 4096  }
  0x3c   :  { %744 = vsyncadd [#allocation9], 4294963200  ;;  %v754_v0 = vmov 0.0   ;;  %vm755_vm0 = vmmov 0   ;;  %v107_v1 = vld [vmem:[#allocation5 + $0x78] sm:$0xff]  ;;  %v106_v2 = vld [vmem:[#allocation5 + $0x70] sm:$0xff]  ;;  %v190_v27 = vlaneseq }
  0x3d   :  { %498 = vmatprep.subr.mxu0 %v754_v0  ;;  %530 = vmatprep.mubr.msk.f32.mxu0 %vm755_vm0, %v754_v0  ;;  %v105_v3 = vld [vmem:[#allocation5 + $0x68] sm:$0xff]  ;;  %v104_v4 = vld [vmem:[#allocation5 + $0x60] sm:$0xff]  ;;  %v103_v5 = vld [vmem:[#allocation5 + $0x58] sm:$0xff]  ;;  %s756_s8 = smov [#allocation11]  }
  0x3e   :  { %533 = vmatprep.subr.mxu1 %v754_v0  ;;  %565 = vmatprep.mubr.msk.f32.mxu1 %vm755_vm0, %v754_v0  ;;  %v102_v6 = vld [vmem:[#allocation5 + $0x50] sm:$0xff]  ;;  %v101_v7 = vld [vmem:[#allocation5 + $0x48] sm:$0xff]  ;;  %v100_v8 = vld [vmem:[#allocation5 + $0x40] sm:$0xff]  ;;  %v849_v28 = vand.u32 127, %v190_v27  ;;  %s429_s9 = sshll.u32 %s756_s8, 4  ;;  %s430_s9 = int_to_ptr.vmem [resolvable:$true] %s429_s9 }
  0x3f   :  { %499 = vmatpush3.msra.mxu0 %v107_v1  ;;  %v99_v9 = vld [vmem:[#allocation5 + $0x38] sm:$0xff]  ;;  %v98_v10 = vld [vmem:[#allocation5 + $0x30] sm:$0xff]  ;;  %v97_v11 = vld [vmem:[#allocation5 + $0x28] sm:$0xff]  ;;  %s719_s10 = scalar_lea.vmem %s430_s9, 128  ;;  %p724_p12 = scmp.lt.s32.totalorder %s430_s9, %s430_s9 }
  0x40   :  { %500 = vmatprep.subr.mxu0 %v754_v0  ;;  %v96_v12 = vld [vmem:[#allocation5 + $0x20] sm:$0xff]  ;;  %v95_v13 = vld [vmem:[#allocation5 + $0x18] sm:$0xff]  ;;  %v94_v14 = vld [vmem:[#allocation5 + $0x10] sm:$0xff]  ;;  %vm192_vm1 = vcmp.lt.s32.totalorder %v849_v28, 32  ;;  %p720_p11 = scmp.ne.s32.totalorder %s430_s9, %s719_s10  ;;  %p725_p13 = scmp.lt.s32.totalorder %s719_s10, %s719_s10 }
  0x41   :  { %501 = vmatpush3.msra.mxu0 %v106_v2  ;;  %v93_v15 = vld [vmem:[#allocation5 + $0x8] sm:$0xff]  ;;  %v92_v16 = vld [vmem:[#allocation5] sm:$0xff]  ;;  %v91_v17 = vld [vmem:[#allocation2] sm:$0xff] }
  0x42   :  { %502 = vmatprep.subr.mxu0 %v754_v0  ;;  %v440_v18 = vld [vmem:[#allocation7] ss:$0 sm:$0xff]  ;;  %v225_v24 = vld [vmem:[#allocation8 + $0x70] sm:$0xff]  ;;  %v224_v25 = vld [vmem:[#allocation8 + $0x68] sm:$0xff]  ;;  %p726_p0 = por %p725_p13, %p724_p12 }
  0x43   :  { %503 = vmatpush3.msra.mxu0 %v105_v3  ;;  %v226_v23 = vld [vmem:[#allocation8 + $0x78] sm:$0xff]  ;;  %v223_v26 = vld [vmem:[#allocation8 + $0x60] sm:$0xff]  ;;  %v221_v35 = vld [vmem:[#allocation8 + $0x50] sm:$0xff] }
  0x44   :  { %504 = vmatprep.subr.mxu0 %v754_v0  ;;  %534 = vmatpush3.msra.mxu1 %v226_v23  ;;  %v222_v34 = vld [vmem:[#allocation8 + $0x58] sm:$0xff]  ;;  %v220_v36 = vld [vmem:[#allocation8 + $0x48] sm:$0xff]  ;;  %v219_v37 = vld [vmem:[#allocation8 + $0x40] sm:$0xff]  ;;  %p727_p1 = pnand %p726_p0, %p720_p11 }
  0x45   :  { %505 = vmatpush3.msra.mxu0 %v104_v4  ;;  %535 = vmatprep.subr.mxu1 %v754_v0  ;;  %v218_v38 = vld [vmem:[#allocation8 + $0x38] sm:$0xff]  ;;  %v217_v39 = vld [vmem:[#allocation8 + $0x30] sm:$0xff]  ;;  %v216_v40 = vld [vmem:[#allocation8 + $0x28] sm:$0xff] }
  0x46   :  { %506 = vmatprep.subr.mxu0 %v754_v0  ;;  %536 = vmatpush3.msra.mxu1 %v225_v24  ;;  %v215_v41 = vld [vmem:[#allocation8 + $0x20] sm:$0xff]  ;;  %v214_v42 = vld [vmem:[#allocation8 + $0x18] sm:$0xff]  ;;  %v213_v43 = vld [vmem:[#allocation8 + $0x10] sm:$0xff] }
  0x47   :  { %507 = vmatpush3.msra.mxu0 %v103_v5  ;;  %537 = vmatprep.subr.mxu1 %v754_v0  ;;  %v212_v44 = vld [vmem:[#allocation8 + $0x8] sm:$0xff]  ;;  %v211_v45 = vld [vmem:[#allocation8] sm:$0xff]  ;;  %v441_v50 = vld [vmem:[#allocation7 + $0x1] ss:$0 sm:$0xff] }
  0x48   :  { %508 = vmatprep.subr.mxu0 %v754_v0  ;;  %538 = vmatpush3.msra.mxu1 %v224_v25  ;;  %v442_v52 = vld [vmem:[#allocation7 + $0x2] ss:$0 sm:$0xff]  ;;  %v443_v55 = vld [vmem:[%s901_s4] ss:$0 sm:$0xff]  ;;  %v340_v62 = vld [vmem:[#allocation10 + $0x68] sm:$0xff] }
  0x49   :  { %509 = vmatpush3.msra.mxu0 %v102_v6  ;;  %539 = vmatprep.subr.mxu1 %v754_v0  ;;  %v342_v60 = vld [vmem:[#allocation10 + $0x78] sm:$0xff]  ;;  %v341_v61 = vld [vmem:[#allocation10 + $0x70] sm:$0xff]  ;;  %v339_v63 = vld [vmem:[#allocation10 + $0x60] sm:$0xff] }
  0x4a   :  { %510 = vmatprep.subr.mxu0 %v754_v0  ;;  %540 = vmatpush3.msra.mxu1 %v223_v26  ;;  %v338_v6 = vld [vmem:[#allocation10 + $0x58] sm:$0xff]  ;;  %v445_v24 = vld [vmem:[%s901_s4 + $0x2] ss:$0 sm:$0xff] }
  0x4b   :  { %511 = vmatpush3.msra.mxu0 %v101_v7  ;;  %541 = vmatprep.subr.mxu1 %v754_v0  ;;  %v337_v7 = vld [vmem:[#allocation10 + $0x50] sm:$0xff] }
  0x4c   :  { %512 = vmatprep.subr.mxu0 %v754_v0  ;;  %542 = vmatpush3.msra.mxu1 %v222_v34 }
  0x4d   :  { %513 = vmatpush3.msra.mxu0 %v100_v8  ;;  %543 = vmatprep.subr.mxu1 %v754_v0  ;;  %v336_v8 = vld [vmem:[#allocation10 + $0x48] sm:$0xff] }
  0x4e   :  { %514 = vmatprep.subr.mxu0 %v754_v0  ;;  %544 = vmatpush3.msra.mxu1 %v221_v35 }
  0x4f   :  { %515 = vmatpush3.msra.mxu0 %v99_v9  ;;  %545 = vmatprep.subr.mxu1 %v754_v0  ;;  %v335_v9 = vld [vmem:[#allocation10 + $0x40] sm:$0xff] }
  0x50   :  { %516 = vmatprep.subr.mxu0 %v754_v0  ;;  %546 = vmatpush3.msra.mxu1 %v220_v36 }
  0x51   :  { %517 = vmatpush3.msra.mxu0 %v98_v10  ;;  %547 = vmatprep.subr.mxu1 %v754_v0  ;;  %v334_v10 = vld [vmem:[#allocation10 + $0x38] sm:$0xff] }
  0x52   :  { %518 = vmatprep.subr.mxu0 %v754_v0  ;;  %548 = vmatpush3.msra.mxu1 %v219_v37 }
  0x53   :  { %519 = vmatpush3.msra.mxu0 %v97_v11  ;;  %549 = vmatprep.subr.mxu1 %v754_v0  ;;  %v333_v11 = vld [vmem:[#allocation10 + $0x30] sm:$0xff] }
  0x54   :  { %520 = vmatprep.subr.mxu0 %v754_v0  ;;  %550 = vmatpush3.msra.mxu1 %v218_v38 }
  0x55   :  { %521 = vmatpush3.msra.mxu0 %v96_v12  ;;  %551 = vmatprep.subr.mxu1 %v754_v0  ;;  %v332_v12 = vld [vmem:[#allocation10 + $0x28] sm:$0xff] }
  0x56   :  { %522 = vmatprep.subr.mxu0 %v754_v0  ;;  %552 = vmatpush3.msra.mxu1 %v217_v39 }
  0x57   :  { %523 = vmatpush3.msra.mxu0 %v95_v13  ;;  %553 = vmatprep.subr.mxu1 %v754_v0  ;;  %v331_v13 = vld [vmem:[#allocation10 + $0x20] sm:$0xff] }
  0x58   :  { %524 = vmatprep.subr.mxu0 %v754_v0  ;;  %554 = vmatpush3.msra.mxu1 %v216_v40 }
  0x59   :  { %525 = vmatpush3.msra.mxu0 %v94_v14  ;;  %555 = vmatprep.subr.mxu1 %v754_v0  ;;  %v330_v14 = vld [vmem:[#allocation10 + $0x18] sm:$0xff] }
  0x5a   :  { %526 = vmatprep.subr.mxu0 %v754_v0  ;;  %556 = vmatpush3.msra.mxu1 %v215_v41 }
  0x5b   :  { %527 = vmatpush3.msra.mxu0 %v93_v15  ;;  %557 = vmatprep.subr.mxu1 %v754_v0  ;;  %v329_v15 = vld [vmem:[#allocation10 + $0x10] sm:$0xff] }
  0x5c   :  { %528 = vmatprep.subr.mxu0 %v754_v0  ;;  %558 = vmatpush3.msra.mxu1 %v214_v42 }
  0x5d   :  { %529 = vmatpush3.msra.mxu0 %v92_v16  ;;  %559 = vmatprep.subr.mxu1 %v754_v0  ;;  %v328_v16 = vld [vmem:[#allocation10 + $0x8] sm:$0xff] }
  0x5e   :  { %531 = vmatmul.mubr.f32.vlgmr.msra.gmra.mxu0 %v91_v17  ;;  %568 = vmatprep.subr.mxu0 %v754_v0  ;;  %v327_v17 = vld [vmem:[#allocation10] sm:$0xff] }
  0x5f   :  { %600 = vmatprep.mubr.msk.f32.mxu0 %vm755_vm0, %v754_v0  ;;  %560 = vmatpush3.msra.mxu1 %v213_v43 }
  0x60   :  { %561 = vmatprep.subr.mxu1 %v754_v0  ;;  %569 = vmatpush3.msra.mxu0 %v342_v60 }
  0x61   :  { %562 = vmatpush3.msra.mxu1 %v212_v44  ;;  %570 = vmatprep.subr.mxu0 %v754_v0 }
  0x62   :  { %563 = vmatprep.subr.mxu1 %v754_v0  ;;  %571 = vmatpush3.msra.mxu0 %v341_v61 }
  0x63   :  { %564 = vmatpush3.msra.mxu1 %v211_v45  ;;  %572 = vmatprep.subr.mxu0 %v754_v0 }
  0x64   :  { %573 = vmatpush3.msra.mxu0 %v340_v62 }
  0x65   :  { %574 = vmatprep.subr.mxu0 %v754_v0 }
  0x66   :  { %575 = vmatpush3.msra.mxu0 %v339_v63 }
  0x67   :  { %576 = vmatprep.subr.mxu0 %v754_v0 }
  0x68   :  { %577 = vmatpush3.msra.mxu0 %v338_v6 }
  0x69   :  { %578 = vmatprep.subr.mxu0 %v754_v0 }
  0x6a   :  { %579 = vmatpush3.msra.mxu0 %v337_v7 }
  0x6b   :  { %580 = vmatprep.subr.mxu0 %v754_v0 }
  0x6c   :  { %581 = vmatpush3.msra.mxu0 %v336_v8 }
  0x6d   :  { %582 = vmatprep.subr.mxu0 %v754_v0 }
  0x6e   :  { %583 = vmatpush3.msra.mxu0 %v335_v9 }
  0x6f   :  { %584 = vmatprep.subr.mxu0 %v754_v0 }
  0x70   :  { %585 = vmatpush3.msra.mxu0 %v334_v10 }
  0x71   :  { %586 = vmatprep.subr.mxu0 %v754_v0 }
  0x72   :  { %587 = vmatpush3.msra.mxu0 %v333_v11 }
  0x73   :  { %588 = vmatprep.subr.mxu0 %v754_v0 }
  0x74   :  { %589 = vmatpush3.msra.mxu0 %v332_v12 }
  0x75   :  { %590 = vmatprep.subr.mxu0 %v754_v0 }
  0x76   :  { %591 = vmatpush3.msra.mxu0 %v331_v13 }
  0x77   :  { %592 = vmatprep.subr.mxu0 %v754_v0 }
  0x78   :  { %593 = vmatpush3.msra.mxu0 %v330_v14 }
  0x79   :  { %594 = vmatprep.subr.mxu0 %v754_v0 }
  0x7a   :  { %595 = vmatpush3.msra.mxu0 %v329_v15 }
  0x7b   :  { %596 = vmatprep.subr.mxu0 %v754_v0 }
  0x7c   :  { %597 = vmatpush3.msra.mxu0 %v328_v16 }
  0x7d   :  { %598 = vmatprep.subr.mxu0 %v754_v0  ;;  %v446_v0 = vld [vmem:[%s903_s6] ss:$0 sm:$0xff] }
  0x7e   :  { %599 = vmatpush3.msra.mxu0 %v327_v17 }
 0x11e   :  { %v179_v19 = vpop.f32.mrf.mxu0 }
 0x11f   :  { %v180_v20 = vadd.f32 %v440_v18, %v179_v19 }
 0x120   :  { %v532_v21 = vpop.f32.mrf.mxu0 }
 0x121   :  { %v183_v22 = vmax.f32 %v180_v20, 0.0 }
 0x123   :  { %186 = vadd.xlane.f32.xlu0 %v183_v22 }
 0x1ac   :  { %v187_v29 = vpop.xlane.xlu0 %186 }
 0x1ad   :  { %v188_v30 = vmul.f32 0.03125, %v187_v29 }
 0x1af   :  { %v189_v31 = vsub.f32 %v183_v22, %v188_v30  ;;  %v444_v22 = vld [vmem:[%s901_s4 + $0x1] ss:$0 sm:$0xff] }
 0x1b1   :  { %v193_v32 = vsel %vm192_vm1, %v189_v31, 0.0 }
 0x1b2   :  { %v194_v33 = vmul.f32 %v193_v32, %v193_v32 }
 0x1b4   :  { %195 = vadd.xlane.f32.xlu0 %v194_v33 }
 0x23d   :  { %v196_v46 = vpop.xlane.xlu0 %195 }
 0x23e   :  { %v197_v47 = vmul.f32 0.03125, %v196_v46 }
 0x240   :  { %v198_v48 = vadd.f32 1e-05, %v197_v47 }
 0x242   :  { %613 = vrsqrt.f32 %v198_v48 }
 0x24f   :  { %v614_v49 = vpop.eup %613 }
 0x250   :  { %v200_v51 = vmul.f32 %v614_v49, %v189_v31 }
 0x252   :  { %v205_v53 = vmul.f32 %v441_v50, %v200_v51 }
 0x254   :  { %v210_v54 = vadd.f32 %v442_v52, %v205_v53 }
 0x256   :  { %566 = vmatmul.mubr.f32.vlgmr.msra.gmra.mxu1 %v210_v54 }
 0x316   :  { %v298_v56 = vpop.f32.mrf.mxu1 }
 0x317   :  { %v299_v57 = vadd.f32 %v443_v55, %v298_v56 }
 0x318   :  { %v567_v58 = vpop.f32.mrf.mxu1 }
 0x319   :  { %v302_v59 = vmax.f32 %v299_v57, 0.0 }
 0x31b   :  { %305 = vadd.xlane.f32.xlu1 %v302_v59 }
 0x3a4   :  { %v306_v1 = vpop.xlane.xlu1 %305 }
 0x3a5   :  { %v307_v2 = vmul.f32 0.03125, %v306_v1 }
 0x3a7   :  { %v308_v3 = vsub.f32 %v302_v59, %v307_v2 }
 0x3a9   :  { %v309_v4 = vsel %vm192_vm1, %v308_v3, 0.0 }
 0x3aa   :  { %v310_v5 = vmul.f32 %v309_v4, %v309_v4 }
 0x3ac   :  { %311 = vadd.xlane.f32.xlu1 %v310_v5 }
 0x435   :  { %v312_v18 = vpop.xlane.xlu1 %311 }
 0x436   :  { %v313_v19 = vmul.f32 0.03125, %v312_v18 }
 0x438   :  { %v314_v20 = vadd.f32 1e-05, %v313_v19 }
 0x43a   :  { %615 = vrsqrt.f32 %v314_v20 }
 0x447   :  { %v616_v21 = vpop.eup %615 }
 0x448   :  { %v316_v23 = vmul.f32 %v616_v21, %v308_v3 }
 0x44a   :  { %v321_v25 = vmul.f32 %v444_v22, %v316_v23 }
 0x44c   :  { %v326_v26 = vadd.f32 %v445_v24, %v321_v25 }
 0x44e   :  { %601 = vmatmul.mubr.f32.vlgmr.msra.gmra.mxu0 %v326_v26 }
 0x50e   :  { %v416_v27 = vpop.f32.mrf.mxu0 }
 0x50f   :  { %v417_v28 = vadd.f32 %v446_v0, %v416_v27 }
 0x510   :  { %v602_v29 = vpop.f32.mrf.mxu0 }
 0x511   :  { %v420_v30 = vmax.f32 %v417_v28, 0.0 }
 0x513   :  { %617 = vtanh.f32 %v420_v30 }
 0x520   :  { %v618_v31 = vpop.eup %617 }
 0x521   :  { %422 = vst [vmem:[#allocation11] sm:$0xff] %v618_v31 }
 0x522   :  { %730 = shalt.err (!%p727_p1)
}
 0x523   :  { %432 = dma.vmem_to_hbm [thread:$0]  %s430_s9, 128, %s904_s7, [#allocation4]  }
 0x524   :  { %745 = dma.done.wait [#allocation4], 128  }
 0x525   :  { %746 = vsyncadd [#allocation4], 4294967168 }
 0x526   :  { %436 = vsyncpa [#allocation3], 1 }
 0x527   :  { %437 = vsyncpa [#allocation6], 1 }
 0x528   :  { %438 = vsyncpa [#allocation9], 1 }
 0x529   :  { %439 = vsyncpa [#allocation4], 1 }

</bundles_post_ra>
